<compile_context>
chip_gen: v6e
topology: v6e:2x2x1
jax: 0.10.0
libtpu: 0.0.40
codegen_flags: <defaults>
</compile_context>

<pallas_src>
import numpy as np
import jax
import jax.numpy as jnp
from jax.experimental import pallas as pl
from jax.experimental.pallas import tpu as pltpu


# ---------------------------------------------------------------------------
# Fused forward kernel: FoutLayer1+ReLU -> community max-pool -> FoutLayer2+
# ReLU -> cluster max-pool -> scatter_mean -> fc1+ReLU -> fc2.
# ---------------------------------------------------------------------------
def foutnet_kernel(x_ref, adj1n_ref, adj2n_ref, p0m_ref, p1m_ref, mbn_ref,
                   wc1_ref, wn1_ref, bc1_ref, wc2_ref, wn2_ref, bc2_ref,
                   fw1_ref, fb1_ref, fw2_ref, fb2_ref, out_ref):
    f32 = jnp.float32

    def fout_relu(x, adj_norm, wc, wn, bias):
        # alpha = x @ wc ; gamma = (adj_norm @ x) @ wn == adj_norm @ (x @ wn)
        # (the neighbour-mean 1/deg is folded into adj_norm).  alpha and xn are
        # independent MXU pushes; no lane slices anywhere.
        alpha = jnp.dot(x, wc, preferred_element_type=f32)
        xn = jnp.dot(adj_norm, x, preferred_element_type=f32)
        gamma = jnp.dot(xn, wn, preferred_element_type=f32)
        return jnp.maximum(alpha + gamma + bias, 0.0)

    def cluster_max(x, pm):
        # pm: [k, n, 1] one-hot membership, x: [n, c] -> per-cluster max [k, c]
        # as one fused masked 3-D reduce.  Clusters are asserted non-empty
        # host-side, so -inf never survives the max (matches max_pool_x).
        masked = jnp.where(pm > 0.5, x[None, :, :], -jnp.inf)
        return jnp.max(masked, axis=1)

    # ---- FoutLayer 1 + ReLU -------------------------------------------------
    x = x_ref[...]                                                     # [N, F]
    h1 = fout_relu(x, adj1n_ref[...], wc1_ref[...], wn1_ref[...],
                   bc1_ref[...])                                       # [N, 16]

    # ---- community_pooling(cluster0): per-cluster feature max ---------------
    hx = cluster_max(h1, p0m_ref[...])                                 # [K0, 16]

    # ---- FoutLayer 2 + ReLU (pooled adjacency precomputed host-side) --------
    h2 = fout_relu(hx, adj2n_ref[...], wc2_ref[...], wn2_ref[...],
                   bc2_ref[...])                                       # [K0, 32]

    # ---- max_pool_x(cluster1) -> scatter_mean(batch) -> fc1+ReLU -> fc2 -----
    xp = cluster_max(h2, p1m_ref[...])                                 # [K1, 32]
    # membership matrix is pre-normalised by member count -> single matmul.
    xb = jnp.dot(mbn_ref[...], xp, preferred_element_type=f32)         # [B, 32]
    h = jnp.maximum(
        jnp.dot(xb, fw1_ref[...], preferred_element_type=f32) + fb1_ref[...],
        0.0)                                                           # [B, 64]
    out_ref[...] = (jnp.dot(h, fw2_ref[...], preferred_element_type=f32)
                    + fb2_ref[...])                                    # [B, 1]


# ---------------------------------------------------------------------------
# pallas_call wrapper — the ONLY per-call work is this single kernel launch.
# ---------------------------------------------------------------------------
def _full_spec(shape):
    nd = len(shape)
    return pl.BlockSpec(tuple(shape), lambda i, _nd=nd: (0,) * _nd)


@jax.jit
def foutnet_forward(x, consts, params):
    args = (x,
            consts["adj1n"], consts["adj2n"],
            consts["p0m"], consts["p1m"], consts["mbn"],
            params["wc1"], params["wn1"], params["bc1"],
            params["wc2"], params["wn2"], params["bc2"],
            params["w1"], params["b1"], params["w2"], params["b2"])
    b = consts["mbn"].shape[0]
    c_out = params["w2"].shape[1]
    return pl.pallas_call(
        foutnet_kernel,
        grid=(1,),
        in_specs=[_full_spec(a.shape) for a in args],
        out_specs=pl.BlockSpec((b, c_out), lambda i: (0, 0)),
        out_shape=jax.ShapeDtypeStruct((b, c_out), jnp.float32),
        compiler_params=pltpu.CompilerParams(
            dimension_semantics=("arbitrary",)),
    )(*args)


# ---------------------------------------------------------------------------
# One-time (per graph / per batch-structure) host-side constants.  These are
# NOT recomputed on the per-forward path.
# ---------------------------------------------------------------------------
def prepare_graph(adj, p0, p1, batch, num_graphs):
    adj = np.asarray(adj, np.float32)
    # Row-normalised adjacency: folds the neighbour-mean 1/deg into the matmul.
    # TODO(synk): zero out-degree nodes give NaN rows here, matching the torch
    # reference (mean over an empty neighbour set in FoutLayer).
    adj1n = adj / adj.sum(axis=1, keepdims=True)

    # Pooled adjacency from the RAW 0/1 adjacency (relabel by cluster, drop
    # self loops, coalesce), then row-normalise for layer 2's neighbour mean.
    a2 = p0 @ adj @ p0.T
    k0 = p0.shape[0]
    adj2 = ((a2 > 0.0) & ~np.eye(k0, dtype=bool)).astype(np.float32)
    deg2 = adj2.sum(axis=1, keepdims=True)
    # TODO(synk): deg2 == 0 (cluster with no inter-cluster edge) gives NaN,
    # matching torch.mean over an empty neighbour set.
    adj2n = adj2 / deg2

    # Batch id of every pooled / twice-pooled cluster, then a batch-membership
    # matrix pre-normalised by member count so scatter_mean is one matmul.
    batch_pool0 = (p0 @ batch) / p0.sum(axis=1)
    batch_pool1 = (p1 @ batch_pool0) / p1.sum(axis=1)
    mb = (np.arange(num_graphs)[:, None]
          == np.rint(batch_pool1)[None, :]).astype(np.float32)        # [B, K1]
    mbn = mb / mb.sum(axis=1, keepdims=True)

    return {
        "adj1n": jnp.asarray(adj1n),
        "adj2n": jnp.asarray(adj2n),
        "p0m": jnp.asarray(p0[:, :, None]),     # [K0, N, 1] membership mask
        "p1m": jnp.asarray(p1[:, :, None]),     # [K1, K0, 1]
        "mbn": jnp.asarray(mbn),                # [B, K1] mean-normalised
    }


# ---------------------------------------------------------------------------
if __name__ == "__main__":
    # 2 graphs x 6 nodes, input_shape (node feature dim) = 8
    num_graphs = 2
    nodes_per_graph = 6
    n_nodes = num_graphs * nodes_per_graph
    in_feat = 8

    key = jax.random.PRNGKey(0)
    keys = jax.random.split(key, 9)

    def uparam(k, shape, fan_in):
        bound = 1.0 / float(np.sqrt(fan_in))
        return jax.random.uniform(k, shape, jnp.float32, -bound, bound)

    params = {
        "wc1": uparam(keys[0], (in_feat, 16), in_feat),
        "wn1": uparam(keys[1], (in_feat, 16), in_feat),
        "bc1": uparam(keys[2], (1, 16), in_feat),
        "wc2": uparam(keys[3], (16, 32), 16),
        "wn2": uparam(keys[4], (16, 32), 16),
        "bc2": uparam(keys[5], (1, 32), 16),
        "w1": uparam(keys[6], (32, 64), 32),
        "b1": jnp.zeros((1, 64), jnp.float32),
        "w2": uparam(keys[7], (64, 1), 64),
        "b2": jnp.zeros((1, 1), jnp.float32),
    }

    # node features
    x = jax.random.normal(keys[8], (n_nodes, in_feat), jnp.float32)

    # bidirectional ring edges inside each graph (edge_index equivalent)
    edges = []
    for g in range(num_graphs):
        off = g * nodes_per_graph
        for i in range(nodes_per_graph):
            j = (i + 1) % nodes_per_graph
            edges.append((off + i, off + j))
            edges.append((off + j, off + i))
    adj_np = np.zeros((n_nodes, n_nodes), np.float32)
    for s, d in edges:
        adj_np[s, d] = 1.0

    batch = np.repeat(np.arange(num_graphs), nodes_per_graph).astype(np.float32)
    # cluster ids already globally unique (== get_preloaded_cluster output)
    cluster0 = np.array([0, 0, 1, 1, 2, 2, 3, 3, 4, 4, 5, 5])           # [12]
    k0 = 6
    cluster1 = np.array([0, 0, 1, 2, 2, 3])                             # [6]
    k1 = 4

    def one_hot(assign, k):
        return (np.arange(k)[:, None] == assign[None, :]).astype(np.float32)

    p0 = one_hot(cluster0, k0)            # [6, 12]
    p1 = one_hot(cluster1, k1)            # [4, 6]

    # host-side sanity checks: non-empty clusters and every cluster belongs to
    # a single graph (required by the -inf-masked max and by scatter_mean).
    assert p0.sum(axis=1).min() > 0 and p1.sum(axis=1).min() > 0
    for c in range(k0):
        assert np.unique(batch[cluster0 == c]).size == 1

    consts = prepare_graph(adj_np, p0, p1, batch, num_graphs)

    out = foutnet_forward(x, consts, params)
    out = jax.block_until_ready(out)

    # ---- pure-numpy reference mirroring the torch edge-list semantics ----
    def np_p(a):
        return np.asarray(a)

    def ref_fout(xn, edge_list, wc, wn, b):
        alpha = xn @ wc
        beta = xn @ wn
        gamma = np.zeros_like(alpha)
        for n in range(xn.shape[0]):
            nbrs = [d for (s, d) in edge_list if s == n]
            gamma[n] = beta[np.array(nbrs)].mean(axis=0)
        return np.maximum(alpha + gamma + b, 0.0)

    def ref_pool_max(xn, assign, k):
        out_ = np.full((k, xn.shape[1]), -np.inf, np.float32)
        for n in range(xn.shape[0]):
            out_[assign[n]] = np.maximum(out_[assign[n]], xn[n])
        return out_

    def ref_pool_edges(edge_list, assign):
        new = set()
        for s, d in edge_list:
            cs, cd = int(assign[s]), int(assign[d])
            if cs != cd:
                new.add((cs, cd))
        return sorted(new)

    h1 = ref_fout(np_p(x), edges, np_p(params["wc1"]), np_p(params["wn1"]),
                  np_p(params["bc1"]))
    hx = ref_pool_max(h1, cluster0, k0)
    hedges = ref_pool_edges(edges, cluster0)
    h2 = ref_fout(hx, hedges, np_p(params["wc2"]), np_p(params["wn2"]),
                  np_p(params["bc2"]))
    x3 = ref_pool_max(h2, cluster1, k1)
    batch_pool0 = (p0 @ batch) / p0.sum(1)
    batch_pool1 = (p1 @ batch_pool0) / p1.sum(1)
    b_ids = np.rint(batch_pool1).astype(np.int64)
    xb = np.stack([x3[b_ids == g].mean(0) for g in range(num_graphs)])
    hfc = np.maximum(xb @ np_p(params["w1"]) + np_p(params["b1"]), 0.0)
    ref = hfc @ np_p(params["w2"]) + np_p(params["b2"])

    assert out.shape == (num_graphs, 1)
    assert np.allclose(np.asarray(out), ref, atol=1e-4), (out, ref)
    print("KERNEL_OK")
</pallas_src>

<mosaic_0001>
module attributes {stable_mosaic.version = 11 : i64} {
  func.func @foutnet_kernel(%arg0: i32, %arg1: memref<12x8xf32, #tpu.memory_space<vmem>>, %arg2: memref<12x12xf32, #tpu.memory_space<vmem>>, %arg3: memref<6x6xf32, #tpu.memory_space<vmem>>, %arg4: memref<6x12x1xf32, #tpu.memory_space<vmem>>, %arg5: memref<4x6x1xf32, #tpu.memory_space<vmem>>, %arg6: memref<2x4xf32, #tpu.memory_space<vmem>>, %arg7: memref<8x16xf32, #tpu.memory_space<vmem>>, %arg8: memref<8x16xf32, #tpu.memory_space<vmem>>, %arg9: memref<1x16xf32, #tpu.memory_space<vmem>>, %arg10: memref<16x32xf32, #tpu.memory_space<vmem>>, %arg11: memref<16x32xf32, #tpu.memory_space<vmem>>, %arg12: memref<1x32xf32, #tpu.memory_space<vmem>>, %arg13: memref<32x64xf32, #tpu.memory_space<vmem>>, %arg14: memref<1x64xf32, #tpu.memory_space<vmem>>, %arg15: memref<64x1xf32, #tpu.memory_space<vmem>>, %arg16: memref<1x1xf32, #tpu.memory_space<vmem>>, %arg17: memref<2x1xf32, #tpu.memory_space<vmem>>) attributes {dimension_semantics = [#tpu.dimension_semantics<arbitrary>], iteration_bounds = array<i64: 1>, scalar_prefetch = 0 : i64, scratch_operands = 0 : i64, tpu.core_type = #tpu.core_type<tc>, window_params = [{pipeline_mode = #tpu.pipeline_mode<synchronous>, transform_indices = @transform_0, window_bounds = array<i64: 12, 8>}, {pipeline_mode = #tpu.pipeline_mode<synchronous>, transform_indices = @transform_1, window_bounds = array<i64: 12, 12>}, {pipeline_mode = #tpu.pipeline_mode<synchronous>, transform_indices = @transform_2, window_bounds = array<i64: 6, 6>}, {pipeline_mode = #tpu.pipeline_mode<synchronous>, transform_indices = @transform_3, window_bounds = array<i64: 6, 12, 1>}, {pipeline_mode = #tpu.pipeline_mode<synchronous>, transform_indices = @transform_4, window_bounds = array<i64: 4, 6, 1>}, {pipeline_mode = #tpu.pipeline_mode<synchronous>, transform_indices = @transform_5, window_bounds = array<i64: 2, 4>}, {pipeline_mode = #tpu.pipeline_mode<synchronous>, transform_indices = @transform_6, window_bounds = array<i64: 8, 16>}, {pipeline_mode = #tpu.pipeline_mode<synchronous>, transform_indices = @transform_7, window_bounds = array<i64: 8, 16>}, {pipeline_mode = #tpu.pipeline_mode<synchronous>, transform_indices = @transform_8, window_bounds = array<i64: 1, 16>}, {pipeline_mode = #tpu.pipeline_mode<synchronous>, transform_indices = @transform_9, window_bounds = array<i64: 16, 32>}, {pipeline_mode = #tpu.pipeline_mode<synchronous>, transform_indices = @transform_10, window_bounds = array<i64: 16, 32>}, {pipeline_mode = #tpu.pipeline_mode<synchronous>, transform_indices = @transform_11, window_bounds = array<i64: 1, 32>}, {pipeline_mode = #tpu.pipeline_mode<synchronous>, transform_indices = @transform_12, window_bounds = array<i64: 32, 64>}, {pipeline_mode = #tpu.pipeline_mode<synchronous>, transform_indices = @transform_13, window_bounds = array<i64: 1, 64>}, {pipeline_mode = #tpu.pipeline_mode<synchronous>, transform_indices = @transform_14, window_bounds = array<i64: 64, 1>}, {pipeline_mode = #tpu.pipeline_mode<synchronous>, transform_indices = @transform_15, window_bounds = array<i64: 1, 1>}, {pipeline_mode = #tpu.pipeline_mode<synchronous>, transform_indices = @transform_16, window_bounds = array<i64: 2, 1>}]} {
    %c0 = arith.constant 0 : index
    %c0_0 = arith.constant 0 : index
    %0 = vector.load %arg1[%c0, %c0_0] : memref<12x8xf32, #tpu.memory_space<vmem>>, vector<12x8xf32>
    %c0_1 = arith.constant 0 : index
    %c0_2 = arith.constant 0 : index
    %1 = vector.load %arg2[%c0_1, %c0_2] : memref<12x12xf32, #tpu.memory_space<vmem>>, vector<12x12xf32>
    %c0_3 = arith.constant 0 : index
    %c0_4 = arith.constant 0 : index
    %2 = vector.load %arg7[%c0_3, %c0_4] : memref<8x16xf32, #tpu.memory_space<vmem>>, vector<8x16xf32>
    %c0_5 = arith.constant 0 : index
    %c0_6 = arith.constant 0 : index
    %3 = vector.load %arg8[%c0_5, %c0_6] : memref<8x16xf32, #tpu.memory_space<vmem>>, vector<8x16xf32>
    %c0_7 = arith.constant 0 : index
    %c0_8 = arith.constant 0 : index
    %4 = vector.load %arg9[%c0_7, %c0_8] : memref<1x16xf32, #tpu.memory_space<vmem>>, vector<1x16xf32>
    %cst = arith.constant dense<0.000000e+00> : vector<12x16xf32>
    %5 = tpu.matmul %0, %2, %cst {dimension_numbers = #tpu.dot_dimension_numbers<[1], [0], [0], [1], [0, 0, 1, 1], [], []>} : vector<12x8xf32>, vector<8x16xf32>, vector<12x16xf32> -> vector<12x16xf32>
    %cst_9 = arith.constant dense<0.000000e+00> : vector<12x8xf32>
    %6 = tpu.matmul %1, %0, %cst_9 {dimension_numbers = #tpu.dot_dimension_numbers<[1], [0], [0], [1], [0, 0, 1, 1], [], []>} : vector<12x12xf32>, vector<12x8xf32>, vector<12x8xf32> -> vector<12x8xf32>
    %cst_10 = arith.constant dense<0.000000e+00> : vector<12x16xf32>
    %7 = tpu.matmul %6, %3, %cst_10 {dimension_numbers = #tpu.dot_dimension_numbers<[1], [0], [0], [1], [0, 0, 1, 1], [], []>} : vector<12x8xf32>, vector<8x16xf32>, vector<12x16xf32> -> vector<12x16xf32>
    %8 = arith.addf %5, %7 : vector<12x16xf32>
    %9 = vector.broadcast %4 : vector<1x16xf32> to vector<12x16xf32>
    %10 = arith.addf %8, %9 : vector<12x16xf32>
    %cst_11 = arith.constant 0.000000e+00 : f32
    %11 = vector.broadcast %cst_11 : f32 to vector<12x16xf32>
    %12 = arith.maximumf %10, %11 : vector<12x16xf32>
    %c0_12 = arith.constant 0 : index
    %c0_13 = arith.constant 0 : index
    %c0_14 = arith.constant 0 : index
    %13 = vector.load %arg4[%c0_12, %c0_13, %c0_14] : memref<6x12x1xf32, #tpu.memory_space<vmem>>, vector<6x12x1xf32>
    %cst_15 = arith.constant 5.000000e-01 : f32
    %14 = vector.broadcast %cst_15 : f32 to vector<6x12x1xf32>
    %15 = arith.cmpf ogt, %13, %14 : vector<6x12x1xf32>
    %16 = vector.shape_cast %12 : vector<12x16xf32> to vector<1x12x16xf32>
    %cst_16 = arith.constant 0xFF800000 : f32
    %17 = vector.shape_cast %15 : vector<6x12x1xi1> to vector<6x12x1xi1>
    %18 = vector.broadcast %17 : vector<6x12x1xi1> to vector<6x12x16xi1>
    %19 = vector.shape_cast %16 : vector<1x12x16xf32> to vector<1x12x16xf32>
    %20 = vector.broadcast %19 : vector<1x12x16xf32> to vector<6x12x16xf32>
    %21 = vector.broadcast %cst_16 : f32 to vector<6x12x16xf32>
    %22 = arith.select %18, %20, %21 : vector<6x12x16xi1>, vector<6x12x16xf32>
    %cst_17 = arith.constant dense<0xFF800000> : vector<6x16xf32>
    %23 = vector.multi_reduction <maximumf>, %22, %cst_17 [1] : vector<6x12x16xf32> to vector<6x16xf32>
    %c0_18 = arith.constant 0 : index
    %c0_19 = arith.constant 0 : index
    %24 = vector.load %arg3[%c0_18, %c0_19] : memref<6x6xf32, #tpu.memory_space<vmem>>, vector<6x6xf32>
    %c0_20 = arith.constant 0 : index
    %c0_21 = arith.constant 0 : index
    %25 = vector.load %arg10[%c0_20, %c0_21] : memref<16x32xf32, #tpu.memory_space<vmem>>, vector<16x32xf32>
    %c0_22 = arith.constant 0 : index
    %c0_23 = arith.constant 0 : index
    %26 = vector.load %arg11[%c0_22, %c0_23] : memref<16x32xf32, #tpu.memory_space<vmem>>, vector<16x32xf32>
    %c0_24 = arith.constant 0 : index
    %c0_25 = arith.constant 0 : index
    %27 = vector.load %arg12[%c0_24, %c0_25] : memref<1x32xf32, #tpu.memory_space<vmem>>, vector<1x32xf32>
    %cst_26 = arith.constant dense<0.000000e+00> : vector<6x32xf32>
    %28 = tpu.matmul %23, %25, %cst_26 {dimension_numbers = #tpu.dot_dimension_numbers<[1], [0], [0], [1], [0, 0, 1, 1], [], []>} : vector<6x16xf32>, vector<16x32xf32>, vector<6x32xf32> -> vector<6x32xf32>
    %cst_27 = arith.constant dense<0.000000e+00> : vector<6x16xf32>
    %29 = tpu.matmul %24, %23, %cst_27 {dimension_numbers = #tpu.dot_dimension_numbers<[1], [0], [0], [1], [0, 0, 1, 1], [], []>} : vector<6x6xf32>, vector<6x16xf32>, vector<6x16xf32> -> vector<6x16xf32>
    %cst_28 = arith.constant dense<0.000000e+00> : vector<6x32xf32>
    %30 = tpu.matmul %29, %26, %cst_28 {dimension_numbers = #tpu.dot_dimension_numbers<[1], [0], [0], [1], [0, 0, 1, 1], [], []>} : vector<6x16xf32>, vector<16x32xf32>, vector<6x32xf32> -> vector<6x32xf32>
    %31 = arith.addf %28, %30 : vector<6x32xf32>
    %32 = vector.broadcast %27 : vector<1x32xf32> to vector<6x32xf32>
    %33 = arith.addf %31, %32 : vector<6x32xf32>
    %cst_29 = arith.constant 0.000000e+00 : f32
    %34 = vector.broadcast %cst_29 : f32 to vector<6x32xf32>
    %35 = arith.maximumf %33, %34 : vector<6x32xf32>
    %c0_30 = arith.constant 0 : index
    %c0_31 = arith.constant 0 : index
    %c0_32 = arith.constant 0 : index
    %36 = vector.load %arg5[%c0_30, %c0_31, %c0_32] : memref<4x6x1xf32, #tpu.memory_space<vmem>>, vector<4x6x1xf32>
    %cst_33 = arith.constant 5.000000e-01 : f32
    %37 = vector.broadcast %cst_33 : f32 to vector<4x6x1xf32>
    %38 = arith.cmpf ogt, %36, %37 : vector<4x6x1xf32>
    %39 = vector.shape_cast %35 : vector<6x32xf32> to vector<1x6x32xf32>
    %cst_34 = arith.constant 0xFF800000 : f32
    %40 = vector.shape_cast %38 : vector<4x6x1xi1> to vector<4x6x1xi1>
    %41 = vector.broadcast %40 : vector<4x6x1xi1> to vector<4x6x32xi1>
    %42 = vector.shape_cast %39 : vector<1x6x32xf32> to vector<1x6x32xf32>
    %43 = vector.broadcast %42 : vector<1x6x32xf32> to vector<4x6x32xf32>
    %44 = vector.broadcast %cst_34 : f32 to vector<4x6x32xf32>
    %45 = arith.select %41, %43, %44 : vector<4x6x32xi1>, vector<4x6x32xf32>
    %cst_35 = arith.constant dense<0xFF800000> : vector<4x32xf32>
    %46 = vector.multi_reduction <maximumf>, %45, %cst_35 [1] : vector<4x6x32xf32> to vector<4x32xf32>
    %c0_36 = arith.constant 0 : index
    %c0_37 = arith.constant 0 : index
    %47 = vector.load %arg6[%c0_36, %c0_37] : memref<2x4xf32, #tpu.memory_space<vmem>>, vector<2x4xf32>
    %cst_38 = arith.constant dense<0.000000e+00> : vector<2x32xf32>
    %48 = tpu.matmul %47, %46, %cst_38 {dimension_numbers = #tpu.dot_dimension_numbers<[1], [0], [0], [1], [0, 0, 1, 1], [], []>} : vector<2x4xf32>, vector<4x32xf32>, vector<2x32xf32> -> vector<2x32xf32>
    %c0_39 = arith.constant 0 : index
    %c0_40 = arith.constant 0 : index
    %49 = vector.load %arg13[%c0_39, %c0_40] : memref<32x64xf32, #tpu.memory_space<vmem>>, vector<32x64xf32>
    %cst_41 = arith.constant dense<0.000000e+00> : vector<2x64xf32>
    %50 = tpu.matmul %48, %49, %cst_41 {dimension_numbers = #tpu.dot_dimension_numbers<[1], [0], [0], [1], [0, 0, 1, 1], [], []>} : vector<2x32xf32>, vector<32x64xf32>, vector<2x64xf32> -> vector<2x64xf32>
    %c0_42 = arith.constant 0 : index
    %c0_43 = arith.constant 0 : index
    %51 = vector.load %arg14[%c0_42, %c0_43] : memref<1x64xf32, #tpu.memory_space<vmem>>, vector<1x64xf32>
    %52 = vector.broadcast %51 : vector<1x64xf32> to vector<2x64xf32>
    %53 = arith.addf %50, %52 : vector<2x64xf32>
    %cst_44 = arith.constant 0.000000e+00 : f32
    %54 = vector.broadcast %cst_44 : f32 to vector<2x64xf32>
    %55 = arith.maximumf %53, %54 : vector<2x64xf32>
    %c0_45 = arith.constant 0 : index
    %c0_46 = arith.constant 0 : index
    %56 = vector.load %arg15[%c0_45, %c0_46] : memref<64x1xf32, #tpu.memory_space<vmem>>, vector<64x1xf32>
    %cst_47 = arith.constant dense<0.000000e+00> : vector<2x1xf32>
    %57 = tpu.matmul %55, %56, %cst_47 {dimension_numbers = #tpu.dot_dimension_numbers<[1], [0], [0], [1], [0, 0, 1, 1], [], []>} : vector<2x64xf32>, vector<64x1xf32>, vector<2x1xf32> -> vector<2x1xf32>
    %c0_48 = arith.constant 0 : index
    %c0_49 = arith.constant 0 : index
    %58 = vector.load %arg16[%c0_48, %c0_49] : memref<1x1xf32, #tpu.memory_space<vmem>>, vector<1x1xf32>
    %59 = vector.broadcast %58 : vector<1x1xf32> to vector<2x1xf32>
    %60 = arith.addf %57, %59 : vector<2x1xf32>
    %c0_50 = arith.constant 0 : index
    %c0_51 = arith.constant 0 : index
    %61 = vector.load %arg17[%c0_50, %c0_51] : memref<2x1xf32, #tpu.memory_space<vmem>>, vector<2x1xf32>
    tpu.vector_store %arg17[%c0_50, %c0_51], %60 {strides = array<i32>} : memref<2x1xf32, #tpu.memory_space<vmem>>, vector<2x1xf32>,
    return
  }
  func.func @transform_0(%arg0: i32) -> (i32, i32) {
    %c0_i32 = arith.constant 0 : i32
    %c0_i32_0 = arith.constant 0 : i32
    %c0_i32_1 = arith.constant 0 : i32
    return %c0_i32, %c0_i32_0 : i32, i32
  }
  func.func @transform_1(%arg0: i32) -> (i32, i32) {
    %c0_i32 = arith.constant 0 : i32
    %c0_i32_0 = arith.constant 0 : i32
    %c0_i32_1 = arith.constant 0 : i32
    return %c0_i32, %c0_i32_0 : i32, i32
  }
  func.func @transform_2(%arg0: i32) -> (i32, i32) {
    %c0_i32 = arith.constant 0 : i32
    %c0_i32_0 = arith.constant 0 : i32
    %c0_i32_1 = arith.constant 0 : i32
    return %c0_i32, %c0_i32_0 : i32, i32
  }
  func.func @transform_3(%arg0: i32) -> (i32, i32, i32) {
    %c0_i32 = arith.constant 0 : i32
    %c0_i32_0 = arith.constant 0 : i32
    %c0_i32_1 = arith.constant 0 : i32
    %c0_i32_2 = arith.constant 0 : i32
    return %c0_i32, %c0_i32_0, %c0_i32_1 : i32, i32, i32
  }
  func.func @transform_4(%arg0: i32) -> (i32, i32, i32) {
    %c0_i32 = arith.constant 0 : i32
    %c0_i32_0 = arith.constant 0 : i32
    %c0_i32_1 = arith.constant 0 : i32
    %c0_i32_2 = arith.constant 0 : i32
    return %c0_i32, %c0_i32_0, %c0_i32_1 : i32, i32, i32
  }
  func.func @transform_5(%arg0: i32) -> (i32, i32) {
    %c0_i32 = arith.constant 0 : i32
    %c0_i32_0 = arith.constant 0 : i32
    %c0_i32_1 = arith.constant 0 : i32
    return %c0_i32, %c0_i32_0 : i32, i32
  }
  func.func @transform_6(%arg0: i32) -> (i32, i32) {
    %c0_i32 = arith.constant 0 : i32
    %c0_i32_0 = arith.constant 0 : i32
    %c0_i32_1 = arith.constant 0 : i32
    return %c0_i32, %c0_i32_0 : i32, i32
  }
  func.func @transform_7(%arg0: i32) -> (i32, i32) {
    %c0_i32 = arith.constant 0 : i32
    %c0_i32_0 = arith.constant 0 : i32
    %c0_i32_1 = arith.constant 0 : i32
    return %c0_i32, %c0_i32_0 : i32, i32
  }
  func.func @transform_8(%arg0: i32) -> (i32, i32) {
    %c0_i32 = arith.constant 0 : i32
    %c0_i32_0 = arith.constant 0 : i32
    %c0_i32_1 = arith.constant 0 : i32
    return %c0_i32, %c0_i32_0 : i32, i32
  }
  func.func @transform_9(%arg0: i32) -> (i32, i32) {
    %c0_i32 = arith.constant 0 : i32
    %c0_i32_0 = arith.constant 0 : i32
    %c0_i32_1 = arith.constant 0 : i32
    return %c0_i32, %c0_i32_0 : i32, i32
  }
  func.func @transform_10(%arg0: i32) -> (i32, i32) {
    %c0_i32 = arith.constant 0 : i32
    %c0_i32_0 = arith.constant 0 : i32
    %c0_i32_1 = arith.constant 0 : i32
    return %c0_i32, %c0_i32_0 : i32, i32
  }
  func.func @transform_11(%arg0: i32) -> (i32, i32) {
    %c0_i32 = arith.constant 0 : i32
    %c0_i32_0 = arith.constant 0 : i32
    %c0_i32_1 = arith.constant 0 : i32
    return %c0_i32, %c0_i32_0 : i32, i32
  }
  func.func @transform_12(%arg0: i32) -> (i32, i32) {
    %c0_i32 = arith.constant 0 : i32
    %c0_i32_0 = arith.constant 0 : i32
    %c0_i32_1 = arith.constant 0 : i32
    return %c0_i32, %c0_i32_0 : i32, i32
  }
  func.func @transform_13(%arg0: i32) -> (i32, i32) {
    %c0_i32 = arith.constant 0 : i32
    %c0_i32_0 = arith.constant 0 : i32
    %c0_i32_1 = arith.constant 0 : i32
    return %c0_i32, %c0_i32_0 : i32, i32
  }
  func.func @transform_14(%arg0: i32) -> (i32, i32) {
    %c0_i32 = arith.constant 0 : i32
    %c0_i32_0 = arith.constant 0 : i32
    %c0_i32_1 = arith.constant 0 : i32
    return %c0_i32, %c0_i32_0 : i32, i32
  }
  func.func @transform_15(%arg0: i32) -> (i32, i32) {
    %c0_i32 = arith.constant 0 : i32
    %c0_i32_0 = arith.constant 0 : i32
    %c0_i32_1 = arith.constant 0 : i32
    return %c0_i32, %c0_i32_0 : i32, i32
  }
  func.func @transform_16(%arg0: i32) -> (i32, i32) {
    %c0_i32 = arith.constant 0 : i32
    %c0_i32_0 = arith.constant 0 : i32
    %c0_i32_1 = arith.constant 0 : i32
    return %c0_i32, %c0_i32_0 : i32, i32
  }
}

</mosaic_0001>

<bundles_post_ra>
// kernel: foutnet_forward.1
= control target key start
LH: loop header
LB: loop body
LE: loop exit
PB: predicated region body
PF: predicated region fallthrough
CT: control target
= control target key end

     0   :  { %vm69_vm0 = vcmask 1043456   ;;  %vm62_vm1 = vcmask 97280   ;;  %vm148_vm2 = vcmask 64512   ;;  %v1179_v6 = vmov 0   ;;  %s1484_s0 = inlined_call_operand.vmem [shape: f32[12,8], index: 0, kind: input, shape index: {}]   ;;  %s1485_s1 = inlined_call_operand.vmem [shape: f32[12,12], index: 1, kind: input, shape index: {}]   ;;  %s1486_s6 = inlined_call_operand.vmem [shape: f32[8,16], index: 6, kind: input, shape index: {}]   ;;  %s1487_s7 = inlined_call_operand.vmem [shape: f32[8,16], index: 7, kind: input, shape index: {}]   ;;  %s1488_s3 = inlined_call_operand.vmem [shape: f32[6,12,1], index: 3, kind: input, shape index: {}]   ;;  %s1489_s4 = inlined_call_operand.vmem [shape: f32[4,6,1], index: 4, kind: input, shape index: {}]   ;;  %s1490_s10 = inlined_call_operand.vmem [shape: f32[16,32], index: 10, kind: input, shape index: {}]   ;;  %s1491_s8 = inlined_call_operand.vmem [shape: f32[1,16], index: 8, kind: input, shape index: {}]   ;;  %s1492_s2 = inlined_call_operand.vmem [shape: f32[6,6], index: 2, kind: input, shape index: {}]   ;;  %s1493_s9 = inlined_call_operand.vmem [shape: f32[16,32], index: 9, kind: input, shape index: {}]   ;;  %s1494_s12 = inlined_call_operand.vmem [shape: f32[32,64], index: 12, kind: input, shape index: {}]   ;;  %s1495_s11 = inlined_call_operand.vmem [shape: f32[1,32], index: 11, kind: input, shape index: {}]   ;;  %s1496_s5 = inlined_call_operand.vmem [shape: f32[2,4], index: 5, kind: input, shape index: {}]   ;;  %s1497_s14 = inlined_call_operand.vmem [shape: f32[64,1], index: 14, kind: input, shape index: {}]   ;;  %s1498_s15 = inlined_call_operand.<no memory space> [shape: f32[1,1], index: 15, kind: input, shape index: {}]   ;;  %s1499_s13 = inlined_call_operand.vmem [shape: f32[1,64], index: 13, kind: input, shape index: {}]   ;;  %s1500_s16 = inlined_call_operand.vmem [shape: f32[2,1], index: 16, kind: output, shape index: {}]  }
   0x1   :  { %1502 = sst [smem:[#allocation3_spill]] %s1484_s0  ;;  %v57_v2 = vld [vmem:[%s1485_s1] sm:$0xff]  ;;  %v58_v3 = vld [vmem:[%s1485_s1 + $0x8] sm:$0xf]  ;;  %1178 = vset.pattern.permute.xlu1 %v1179_v6  ;;  %1177 = vset.pattern.permute.xlu0 %v1179_v6  ;;  %v322_v7 = vld [vmem:[%s1488_s3 + $0x10] sm:$0xff]  ;;  %v1180_v41 = vmov 0.0  }
   0x2   :  { %s1503_s23 = sld [smem:[#allocation3_spill]]  ;;  %1107 = vmatprep.mubr.msk.f32.mxu0 %vm62_vm1, %v57_v2  ;;  %v59_v4 = vld [vmem:[%s1486_s6] sm:$0xff]  ;;  %v323_v9 = vld [vmem:[%s1488_s3 + $0x18] sm:$0xf]  ;;  %vm334_vm3 = vcmp.gt.f32.partialorder %v322_v7, 0.5  ;;  %v326_v18 = vld [vmem:[%s1488_s3 + $0x30] sm:$0xff] }
   0x3   :  { %1115 = vmatprep.subr.mxu1 %v59_v4  ;;  %v60_v5 = vld [vmem:[%s1487_s7] sm:$0xff]  ;;  %vm335_vm5 = vcmp.gt.f32.partialorder %v323_v9, 0.5  ;;  %v321_v10 = vld [vmem:[%s1488_s3 + $0x8] sm:$0xf]  ;;  %v346_v11 = vsel %vm334_vm3, 1, %v1179_v6  ;;  %vm338_vm10 = vcmp.gt.f32.partialorder %v326_v18, 0.5 }
   0x4   :  { %1116 = vmatpush3.msra.mxu1 %v59_v4  ;;  %v320_v8 = vld [vmem:[%s1488_s3] sm:$0xff]  ;;  %vm333_vm6 = vcmp.gt.f32.partialorder %v321_v10, 0.5  ;;  %v325_v13 = vld [vmem:[%s1488_s3 + $0x28] sm:$0xf]  ;;  %363 = vperm.xlu1 %1178, %v346_v11   ;;  %v347_v15 = vsel %vm335_vm5, 1, %v1179_v6  ;;  %v350_v24 = vsel %vm338_vm10, 1, %v1179_v6 }
   0x5   :  { %vm332_vm4 = vcmp.gt.f32.partialorder %v320_v8, 0.5  ;;  %v324_v14 = vld [vmem:[%s1488_s3 + $0x20] sm:$0xff]  ;;  %v345_v16 = vsel %vm333_vm6, 1, %v1179_v6  ;;  %vm337_vm7 = vcmp.gt.f32.partialorder %v325_v13, 0.5  ;;  %v327_v17 = vld [vmem:[%s1488_s3 + $0x38] sm:$0xf]  ;;  %1125 = vmatprep.subr.mxu1 %v1180_v41 }
   0x6   :  { %v344_v12 = vsel %vm332_vm4, 1, %v1179_v6  ;;  %vm336_vm8 = vcmp.gt.f32.partialorder %v324_v14, 0.5  ;;  %v349_v19 = vsel %vm337_vm7, 1, %v1179_v6  ;;  %vm339_vm9 = vcmp.gt.f32.partialorder %v327_v17, 0.5  ;;  %v329_v21 = vld [vmem:[%s1488_s3 + $0x48] sm:$0xf] }
   0x7   :  { %357 = vperm.xlu0 %1177, %v344_v12   ;;  %v348_v20 = vsel %vm336_vm8, 1, %v1179_v6  ;;  %v328_v22 = vld [vmem:[%s1488_s3 + $0x40] sm:$0xff]  ;;  %v351_v23 = vsel %vm339_vm9, 1, %v1179_v6  ;;  %vm341_vm11 = vcmp.gt.f32.partialorder %v329_v21, 0.5  ;;  %v331_v25 = vld [vmem:[%s1488_s3 + $0x58] sm:$0xf] }
   0x8   :  { %v56_v0 = vld [vmem:[%s1503_s23 + $0x8] sm:$0xf]  ;;  %v55_v1 = vld [vmem:[%s1503_s23] sm:$0xff]  ;;  %366 = vperm.xlu1 %1178, %v347_v15   ;;  %vm340_vm12 = vcmp.gt.f32.partialorder %v328_v22, 0.5  ;;  %v330_v26 = vld [vmem:[%s1488_s3 + $0x50] sm:$0xff]  ;;  %v353_v27 = vsel %vm341_vm11, 1, %v1179_v6 }
   0x9   :  { %1103 = vmatprep.subr.msk.mxu0 %vm69_vm0, %v56_v0  ;;  %1117 = vmatprep.mubr.msk.f32.mxu1 %vm148_vm2, %v55_v1  ;;  %v352_v28 = vsel %vm340_vm12, 1, %v1179_v6  ;;  %vm343_vm13 = vcmp.gt.f32.partialorder %v331_v25, 0.5  ;;  %vm342_vm14 = vcmp.gt.f32.partialorder %v330_v26, 0.5  ;;  %v725_v29 = vld [vmem:[%s1489_s4 + $0x8] sm:$0x3f]  ;;  %vm1181_vm5 = vmmov 0  }
   0xa   :  { %1104 = vmatpush3.msk.msra.mxu0 %vm69_vm0, %v56_v0  ;;  %1118 = vmatmul.mubr.msk.f32.vlgmr.msra.gmra.mxu1 %vm148_vm2, %v56_v0  ;;  %v724_v30 = vld [vmem:[%s1489_s4] sm:$0x3f]  ;;  %v355_v31 = vsel %vm343_vm13, 1, %v1179_v6  ;;  %v354_v32 = vsel %vm342_vm14, 1, %v1179_v6  ;;  %vm729_vm15 = vcmp.gt.f32.partialorder %v725_v29, 0.5  ;;  %v476_v42 = vld [vmem:[%s1490_s10 + $0x8] sm:$0xff] }
   0xb   :  { %1105 = vmatprep.subr.mxu0 %v55_v1  ;;  %360 = vperm.xlu0 %1177, %v345_v16   ;;  %v727_v33 = vld [vmem:[%s1489_s4 + $0x18] sm:$0x3f]  ;;  %v726_v34 = vld [vmem:[%s1489_s4 + $0x10] sm:$0x3f]  ;;  %v733_v35 = vsel %vm729_vm15, 1, %v1179_v6  ;;  %vm418_vm13 = vcmask 125952  }
   0xc   :  { %1106 = vmatpush3.msra.mxu0 %v55_v1  ;;  %372 = vperm.xlu1 %1178, %v349_v19   ;;  %vm731_vm3 = vcmp.gt.f32.partialorder %v727_v33, 0.5  ;;  %vm730_vm4 = vcmp.gt.f32.partialorder %v726_v34, 0.5  ;;  %v1057_v54 = vld [vmem:[%s1491_s8] ss:$0 sm:$0xff] }
   0xd   :  { %1108 = vmatmul.mubr.msk.f32.vlgmr.msra.gmra.mxu0 %vm62_vm1, %v58_v3  ;;  %1110 = vmatprep.subr.mxu0 %v60_v5  ;;  %vm728_vm1 = vcmp.gt.f32.partialorder %v724_v30, 0.5  ;;  %v735_v37 = vsel %vm731_vm3, 1, %v1179_v6  ;;  %v734_v38 = vsel %vm730_vm4, 1, %v1179_v6  ;;  %vm416_vm4 = vcmask 130048  }
   0xe   :  { %1111 = vmatpush3.msra.mxu0 %v60_v5  ;;  %v732_v36 = vsel %vm728_vm1, 1, %v1179_v6  ;;  %1129 = vmatprep.mubr.msk.f32.mxu1 %vm1181_vm5, %v1180_v41 }
   0xf   :  { %369 = vperm.xlu0 %1177, %v348_v20   ;;  %1120 = vmatprep.subr.mxu0 %v1180_v41 }
  0x10   :  { %378 = vperm.xlu1 %1178, %v351_v23   ;;  %1126 = vmatpush3.msra.mxu1 %v476_v42 }
  0x11   :  { %1127 = vmatprep.subr.mxu1 %v1180_v41 }
  0x13   :  { %375 = vperm.xlu0 %1177, %v350_v24  }
  0x14   :  { %384 = vperm.xlu1 %1178, %v353_v27  }
  0x17   :  { %381 = vperm.xlu0 %1177, %v352_v28  }
  0x18   :  { %390 = vperm.xlu1 %1178, %v355_v31  }
  0x1b   :  { %387 = vperm.xlu0 %1177, %v354_v32  }
  0x1c   :  { %740 = vperm.xlu1 %1178, %v733_v35  }
  0x1f   :  { %737 = vperm.xlu0 %1177, %v732_v36  }
  0x20   :  { %746 = vperm.xlu1 %1178, %v735_v37  }
  0x23   :  { %743 = vperm.xlu0 %1177, %v734_v38  }
  0x7f   :  { %v364_v43 = vpop.permute.xlu1 %363 }
  0x82   :  { %v358_v44 = vpop.permute.xlu0 %357 }
  0x83   :  { %v367_v45 = vpop.permute.xlu1 %366  ;;  %vm392_vm6 = vcmp.eq.s32.totalorder %v358_v44, 1 }
  0x84   :  { %vm395_vm7 = vcmp.eq.s32.totalorder %v367_v45, 1 }
  0x86   :  { %v361_v46 = vpop.permute.xlu0 %360 }
  0x87   :  { %v373_v47 = vpop.permute.xlu1 %372  ;;  %vm393_vm8 = vcmp.eq.s32.totalorder %v361_v46, 1 }
  0x88   :  { %vm397_vm9 = vcmp.eq.s32.totalorder %v373_v47, 1 }
  0x8a   :  { %v370_v48 = vpop.permute.xlu0 %369 }
  0x8b   :  { %v379_v49 = vpop.permute.xlu1 %378  ;;  %vm396_vm10 = vcmp.eq.s32.totalorder %v370_v48, 1 }
  0x8c   :  { %vm399_vm11 = vcmp.eq.s32.totalorder %v379_v49, 1 }
  0x8e   :  { %v376_v50 = vpop.permute.xlu0 %375 }
  0x8f   :  { %v385_v52 = vpop.permute.xlu1 %384  ;;  %vm398_vm12 = vcmp.eq.s32.totalorder %v376_v50, 1 }
  0x90   :  { %vm401_vm14 = vcmp.eq.s32.totalorder %v385_v52, 1 }
  0x92   :  { %v382_v53 = vpop.permute.xlu0 %381 }
  0x93   :  { %v391_v61 = vpop.permute.xlu1 %390  ;;  %vm400_vm15 = vcmp.eq.s32.totalorder %v382_v53, 1 }
  0x94   :  { %vm403_vm1 = vcmp.eq.s32.totalorder %v391_v61, 1 }
  0x96   :  { %v388_v62 = vpop.permute.xlu0 %387 }
  0x97   :  { %vm402_vm3 = vcmp.eq.s32.totalorder %v388_v62, 1 }
  0xca   :  { %v1119_v51 = vpop.f32.mrf.mxu1 }
  0xcc   :  { %v301_v57 = vpop.f32.mrf.mxu1 }
  0xcd   :  { %v1109_v39 = vpop.f32.mrf.mxu0 }
  0xcf   :  { %v139_v40 = vpop.f32.mrf.mxu0 }
  0xd0   :  { %1112 = vmatprep.mubr.msk.f32.mxu0 %vm148_vm2, %v139_v40 }
  0xd1   :  { %1113 = vmatmul.mubr.msk.f32.vlgmr.msra.gmra.mxu0 %vm148_vm2, %v1109_v39  ;;  %vm394_vm2 = vcmp.eq.s32.totalorder %v364_v43, 1 }
  0xd2   :  { %1122 = vmatprep.mubr.msk.f32.mxu0 %vm1181_vm5, %v1180_v41 }
 0x191   :  { %v1114_v55 = vpop.f32.mrf.mxu0 }
 0x192   :  { %v307_v56 = vadd.f32 %v1119_v51, %v1114_v55 }
 0x193   :  { %v221_v58 = vpop.f32.mrf.mxu0 }
 0x194   :  { %v317_v59 = vadd.f32 %v1057_v54, %v307_v56  ;;  %v302_v60 = vadd.f32 %v301_v57, %v221_v58 }
 0x196   :  { %v319_v63 = vmax.f32 %v317_v59, 0.0  ;;  %v316_v0 = vadd.f32 %v1057_v54, %v302_v60 }
 0x198   :  { %v405_v1 = vsel %vm393_vm8, %v319_v63, -inf  ;;  %v407_v2 = vsel %vm395_vm7, %v319_v63, -inf  ;;  %v409_v3 = vsel %vm397_vm9, %v319_v63, -inf  ;;  %v411_v4 = vsel %vm399_vm11, %v319_v63, -inf }
 0x199   :  { %v419_v5 = vsel %vm418_vm13, %v405_v1, -inf  ;;  %v428_v6 = vsel %vm418_vm13, %v407_v2, -inf  ;;  %v318_v7 = vmax.f32 %v316_v0, 0.0  ;;  %v437_v8 = vsel %vm418_vm13, %v409_v3, -inf }
 0x19a   :  { %v413_v9 = vsel %vm401_vm14, %v319_v63, -inf  ;;  %v415_v10 = vsel %vm403_vm1, %v319_v63, -inf  ;;  %v446_v11 = vsel %vm418_vm13, %v411_v4, -inf  ;;  %vm488_vm7 = vcmask 1043459  }
 0x19b   :  { %v404_v12 = vsel %vm392_vm6, %v318_v7, -inf  ;;  %v406_v13 = vsel %vm394_vm2, %v318_v7, -inf  ;;  %v408_v14 = vsel %vm396_vm10, %v318_v7, -inf  ;;  %v410_v15 = vsel %vm398_vm12, %v318_v7, -inf }
 0x19c   :  { %v417_v16 = vsel %vm416_vm4, %v404_v12, -inf  ;;  %v427_v17 = vsel %vm416_vm4, %v406_v13, -inf  ;;  %v436_v18 = vsel %vm416_vm4, %v408_v14, -inf  ;;  %v412_v19 = vsel %vm400_vm15, %v318_v7, -inf  ;;  %v473_v12 = vld [vmem:[%s1493_s9] sm:$0xff] }
 0x19d   :  { %v420_v20 = vmax.f32 %v417_v16, %v419_v5  ;;  %v429_v21 = vmax.f32 %v427_v17, %v428_v6  ;;  %v414_v22 = vsel %vm402_vm3, %v318_v7, -inf  ;;  %v438_v23 = vmax.f32 %v436_v18, %v437_v8  ;;  %v475_v13 = vld [vmem:[%s1490_s10] sm:$0xff]  ;;  %v872_v18 = vld [vmem:[%s1494_s12 + $0x18] sm:$0xff] }
 0x19e   :  { %v445_v24 = vsel %vm416_vm4, %v410_v15, -inf  ;;  %v454_v25 = vsel %vm416_vm4, %v412_v19, -inf  ;;  %v455_v26 = vsel %vm418_vm13, %v413_v9, -inf  ;;  %v463_v27 = vsel %vm416_vm4, %v414_v22, -inf  ;;  %v472_v9 = vld [vmem:[%s1492_s2] sm:$0x3f]  ;;  %1128 = vmatpush3.msra.mxu1 %v475_v13  ;;  %v738_v22 = vpop.permute.xlu0 %737 }
 0x19f   :  { %v421_v28 = vrot.slane %v420_v20, 4  ;;  %v430_v29 = vrot.slane %v429_v21, 4  ;;  %v439_v30 = vrot.slane %v438_v23, 4  ;;  %v447_v31 = vmax.f32 %v445_v24, %v446_v11  ;;  %v474_v11 = vld [vmem:[%s1493_s9 + $0x8] sm:$0xff]  ;;  %1139 = vmatprep.subr.mxu1 %v1180_v41  ;;  %v871_v19 = vld [vmem:[%s1494_s12 + $0x10] sm:$0xff] }
 0x1a0   :  { %v456_v32 = vmax.f32 %v454_v25, %v455_v26  ;;  %v464_v33 = vsel %vm418_vm13, %v415_v10, -inf  ;;  %vm484_vm2 = vcmask 1041409   ;;  %vm486_vm6 = vcmask 1042434   ;;  %v956_v13 = vld [vmem:[%s1497_s14 + $0x8] sm:$0xff] }
 0x1a1   :  { %v422_v34 = vmax.f32 %v420_v20, %v421_v28  ;;  %v431_v35 = vmax.f32 %v429_v21, %v430_v29  ;;  %v440_v36 = vmax.f32 %v438_v23, %v439_v30  ;;  %v448_v37 = vrot.slane %v447_v31, 4  ;;  %v870_v20 = vld [vmem:[%s1494_s12 + $0x8] sm:$0xff]  ;;  %v741_v21 = vpop.permute.xlu1 %740  ;;  %v1062_v23 = vld [vmem:[%s1495_s11] ss:$0 sm:$0xff] }
 0x1a2   :  { %v457_v38 = vrot.slane %v456_v32, 4  ;;  %v465_v39 = vmax.f32 %v463_v27, %v464_v33  ;;  %vm490_vm8 = vcmask 1044484   ;;  %vm492_vm9 = vcmask 1045509   ;;  %v744_v28 = vpop.permute.xlu0 %743 }
 0x1a3   :  { %v423_v40 = vrot.slane %v422_v34, 2  ;;  %v432_v42 = vrot.slane %v431_v35, 2  ;;  %v441_v43 = vrot.slane %v440_v36, 2  ;;  %v449_v44 = vmax.f32 %v447_v31, %v448_v37 }
 0x1a4   :  { %v458_v45 = vmax.f32 %v456_v32, %v457_v38  ;;  %v466_v46 = vrot.slane %v465_v39, 4  ;;  %vm498_vm10 = vcmask 1045504   ;;  %vm494_vm11 = vcmask 48128  }
 0x1a5   :  { %v424_v47 = vmax.f32 %v422_v34, %v423_v40  ;;  %v433_v48 = vmax.f32 %v431_v35, %v432_v42  ;;  %v442_v49 = vmax.f32 %v440_v36, %v441_v43  ;;  %v450_v50 = vrot.slane %v449_v44, 2  ;;  %v747_v27 = vpop.permute.xlu1 %746 }
 0x1a6   :  { %v459_v51 = vrot.slane %v458_v45, 2  ;;  %v467_v52 = vmax.f32 %v465_v39, %v466_v46  ;;  %vm756_vm12 = vcmask 259072   ;;  %vm749_vm13 = vcmp.eq.s32.totalorder %v741_v21, 1 }
 0x1a7   :  { %v425_v53 = vrot.slane %v424_v47, 1  ;;  %v434_v54 = vrot.slane %v433_v48, 1  ;;  %v443_v55 = vrot.slane %v442_v49, 1  ;;  %v451_v56 = vmax.f32 %v449_v44, %v450_v50 }
 0x1a8   :  { %v460_v57 = vmax.f32 %v458_v45, %v459_v51  ;;  %v468_v58 = vrot.slane %v467_v52, 2  ;;  %vm748_vm14 = vcmp.eq.s32.totalorder %v738_v22, 1  ;;  %vm751_vm15 = vcmp.eq.s32.totalorder %v747_v27, 1 }
 0x1a9   :  { %v426_v59 = vmax.f32 %v424_v47, %v425_v53  ;;  %v435_v60 = vmax.f32 %v433_v48, %v434_v54  ;;  %v444_v61 = vmax.f32 %v442_v49, %v443_v55  ;;  %v452_v62 = vrot.slane %v451_v56, 1 }
 0x1aa   :  { %v461_v63 = vrot.slane %v460_v57, 1  ;;  %v469_v0 = vmax.f32 %v467_v52, %v468_v58  ;;  %vm750_vm1 = vcmp.eq.s32.totalorder %v744_v28, 1  ;;  %vm793_vm3 = vcmask 31744  }
 0x1ab   :  { %v453_v1 = vmax.f32 %v451_v56, %v452_v62  ;;  %v485_v2 = vsel %vm484_vm2, %v435_v60, %v426_v59 }
 0x1ac   :  { %v462_v3 = vmax.f32 %v460_v57, %v461_v63  ;;  %v470_v4 = vrot.slane %v469_v0, 1  ;;  %v487_v5 = vsel %vm486_vm6, %v444_v61, %v485_v2  ;;  %v785_v2 = vld [vmem:[%s1496_s5] sm:$0x3] }
 0x1ad   :  { %v489_v6 = vsel %vm488_vm7, %v453_v1, %v487_v5  ;;  %v962_v5 = vld [vmem:[%s1497_s14 + $0x38] sm:$0xff] }
 0x1ae   :  { %v471_v7 = vmax.f32 %v469_v0, %v470_v4  ;;  %v491_v8 = vsel %vm490_vm8, %v462_v3, %v489_v6  ;;  %v869_v4 = vld [vmem:[%s1494_s12] sm:$0xff]  ;;  %v961_v6 = vld [vmem:[%s1497_s14 + $0x30] sm:$0xff] }
 0x1b0   :  { %v493_v10 = vsel %vm492_vm9, %v471_v7, %v491_v8  ;;  %v960_v7 = vld [vmem:[%s1497_s14 + $0x28] sm:$0xff]  ;;  %v959_v8 = vld [vmem:[%s1497_s14 + $0x20] sm:$0xff] }
 0x1b1   :  { %1121 = vmatpush3.msk.msra.mxu0 %vm498_vm10, %v493_v10 }
 0x1b2   :  { %1123 = vmatmul.mubr.msk.f32.vlgmr.msra.gmra.mxu0 %vm494_vm11, %v472_v9  ;;  %1132 = vmatprep.subr.mxu0 %v1180_v41  ;;  %v958_v9 = vld [vmem:[%s1497_s14 + $0x18] sm:$0xff] }
 0x1b3   :  { %1133 = vmatpush3.msra.mxu0 %v474_v11  ;;  %1136 = vmatprep.mubr.msk.f32.mxu0 %vm1181_vm5, %v1180_v41 }
 0x1b4   :  { %1134 = vmatprep.subr.mxu0 %v1180_v41 }
 0x1b5   :  { %1135 = vmatpush3.msra.mxu0 %v473_v12  ;;  %v957_v12 = vld [vmem:[%s1497_s14 + $0x10] sm:$0xff] }
 0x1b6   :  { %1137 = vmatmul.mubr.msk.f32.vlgmr.msra.gmra.mxu0 %vm416_vm4, %v493_v10  ;;  %1144 = vmatprep.subr.mxu0 %v1180_v41 }
 0x1b7   :  { %1152 = vmatprep.mubr.msk.f32.mxu0 %vm1181_vm5, %v1180_v41  ;;  %1145 = vmatpush3.msra.mxu0 %v872_v18 }
 0x1b8   :  { %1146 = vmatprep.subr.mxu0 %v1180_v41 }
 0x1b9   :  { %1147 = vmatpush3.msra.mxu0 %v871_v19 }
 0x1ba   :  { %1148 = vmatprep.subr.mxu0 %v1180_v41 }
 0x1bb   :  { %1149 = vmatpush3.msra.mxu0 %v870_v20 }
 0x1bc   :  { %1150 = vmatprep.subr.mxu0 %v1180_v41 }
 0x1bd   :  { %1151 = vmatpush3.msra.mxu0 %v869_v4 }
 0x272   :  { %v567_v14 = vpop.f32.mrf.mxu0 }
 0x273   :  { %1130 = vmatmul.mubr.msk.f32.vlgmr.msra.gmra.mxu1 %vm416_vm4, %v567_v14  ;;  %v955_v14 = vld [vmem:[%s1497_s14] sm:$0xff]  ;;  %vm1044_vm4 = vcmask 1024  }
 0x274   :  { %v1124_v15 = vpop.f32.mrf.mxu0  ;;  %1141 = vmatprep.mubr.msk.f32.mxu1 %vm1181_vm5, %v1180_v41 }
 0x275   :  { %v21_v15 = vstv %s1498_s15 }
 0x276   :  { %v712_v16 = vpop.f32.mrf.mxu0  ;;  %22 = vst [vmem:[#allocation2] sm:$0x1] %v21_v15 }
 0x278   :  { %v1138_v17 = vpop.f32.mrf.mxu0 }
 0x27d   :  { %v1067_v21 = vld [vmem:[#allocation2] ss:$0 sm:$0xff] }
 0x333   :  { %v640_v24 = vpop.f32.mrf.mxu1 }
 0x334   :  { %v713_v25 = vadd.f32 %v712_v16, %v640_v24  ;;  %v1065_v16 = vld [vmem:[%s1499_s13] ss:$0 sm:$0xff] }
 0x335   :  { %v1131_v26 = vpop.f32.mrf.mxu1 }
 0x336   :  { %v722_v29 = vadd.f32 %v1062_v23, %v713_v25 }
 0x338   :  { %v723_v30 = vmax.f32 %v722_v29, 0.0 }
 0x33a   :  { %v752_v31 = vsel %vm748_vm14, %v723_v30, -inf  ;;  %v753_v32 = vsel %vm749_vm13, %v723_v30, -inf  ;;  %v754_v33 = vsel %vm750_vm1, %v723_v30, -inf  ;;  %v755_v34 = vsel %vm751_vm15, %v723_v30, -inf }
 0x33b   :  { %v757_v35 = vsel %vm756_vm12, %v752_v31, -inf  ;;  %v764_v36 = vsel %vm756_vm12, %v753_v32, -inf  ;;  %v771_v37 = vsel %vm756_vm12, %v754_v33, -inf  ;;  %v778_v38 = vsel %vm756_vm12, %v755_v34, -inf }
 0x33c   :  { %v758_v39 = vrot.slane %v757_v35, 4  ;;  %v765_v40 = vrot.slane %v764_v36, 4  ;;  %v772_v42 = vrot.slane %v771_v37, 4  ;;  %v779_v43 = vrot.slane %v778_v38, 4 }
 0x33e   :  { %v759_v44 = vmax.f32 %v757_v35, %v758_v39  ;;  %v766_v45 = vmax.f32 %v764_v36, %v765_v40  ;;  %v773_v46 = vmax.f32 %v771_v37, %v772_v42  ;;  %v780_v47 = vmax.f32 %v778_v38, %v779_v43 }
 0x340   :  { %v760_v48 = vrot.slane %v759_v44, 2  ;;  %v767_v49 = vrot.slane %v766_v45, 2  ;;  %v774_v50 = vrot.slane %v773_v46, 2  ;;  %v781_v51 = vrot.slane %v780_v47, 2 }
 0x342   :  { %v761_v52 = vmax.f32 %v759_v44, %v760_v48  ;;  %v768_v53 = vmax.f32 %v766_v45, %v767_v49  ;;  %v775_v54 = vmax.f32 %v773_v46, %v774_v50  ;;  %v782_v55 = vmax.f32 %v780_v47, %v781_v51 }
 0x344   :  { %v762_v56 = vrot.slane %v761_v52, 1  ;;  %v769_v57 = vrot.slane %v768_v53, 1  ;;  %v776_v58 = vrot.slane %v775_v54, 1  ;;  %v783_v59 = vrot.slane %v782_v55, 1 }
 0x346   :  { %v763_v60 = vmax.f32 %v761_v52, %v762_v56  ;;  %v770_v61 = vmax.f32 %v768_v53, %v769_v57  ;;  %v777_v62 = vmax.f32 %v775_v54, %v776_v58  ;;  %v784_v63 = vmax.f32 %v782_v55, %v783_v59 }
 0x348   :  { %v790_v0 = vsel %vm484_vm2, %v770_v61, %v763_v60 }
 0x349   :  { %v791_v1 = vsel %vm486_vm6, %v777_v62, %v790_v0 }
 0x34a   :  { %v792_v3 = vsel %vm488_vm7, %v784_v63, %v791_v1 }
 0x34b   :  { %1140 = vmatpush3.msk.msra.mxu1 %vm69_vm0, %v792_v3  ;;  %vm880_vm0 = vcmask 261120  }
 0x34c   :  { %1142 = vmatmul.mubr.msk.f32.vlgmr.msra.gmra.mxu1 %vm793_vm3, %v785_v2  ;;  %1155 = vmatprep.subr.mxu1 %v1180_v41 }
 0x34d   :  { %1171 = vmatprep.mubr.msk.f32.mxu1 %vm1181_vm5, %v1180_v41  ;;  %1156 = vmatpush3.msra.mxu1 %v962_v5  ;;  %vm970_vm5 = vcmask 523264  }
 0x34e   :  { %1157 = vmatprep.subr.mxu1 %v1180_v41 }
 0x34f   :  { %1158 = vmatpush3.msra.mxu1 %v961_v6 }
 0x350   :  { %1159 = vmatprep.subr.mxu1 %v1180_v41 }
 0x351   :  { %1160 = vmatpush3.msra.mxu1 %v960_v7 }
 0x352   :  { %1161 = vmatprep.subr.mxu1 %v1180_v41 }
 0x353   :  { %1162 = vmatpush3.msra.mxu1 %v959_v8 }
 0x354   :  { %1163 = vmatprep.subr.mxu1 %v1180_v41 }
 0x355   :  { %1164 = vmatpush3.msra.mxu1 %v958_v9 }
 0x356   :  { %1165 = vmatprep.subr.mxu1 %v1180_v41 }
 0x357   :  { %1166 = vmatpush3.msra.mxu1 %v957_v12 }
 0x358   :  { %1167 = vmatprep.subr.mxu1 %v1180_v41 }
 0x359   :  { %1168 = vmatpush3.msra.mxu1 %v956_v13 }
 0x35a   :  { %1169 = vmatprep.subr.mxu1 %v1180_v41 }
 0x35b   :  { %1170 = vmatpush3.msra.mxu1 %v955_v14 }
 0x40c   :  { %v865_v10 = vpop.f32.mrf.mxu1 }
 0x40d   :  { %1153 = vmatmul.mubr.msk.f32.vlgmr.msra.gmra.mxu0 %vm880_vm0, %v865_v10 }
 0x40e   :  { %v1143_v11 = vpop.f32.mrf.mxu1 }
 0x4cd   :  { %v950_v17 = vpop.f32.mrf.mxu0 }
 0x4ce   :  { %v951_v18 = vadd.f32 %v1065_v16, %v950_v17 }
 0x4cf   :  { %v1154_v19 = vpop.f32.mrf.mxu0 }
 0x4d0   :  { %v954_v20 = vmax.f32 %v951_v18, 0.0 }
 0x4d2   :  { %1172 = vmatmul.mubr.msk.f32.vlgmr.msra.gmra.mxu1 %vm970_vm5, %v954_v20 }
 0x592   :  { %v1040_v22 = vpop.f32.mrf.mxu1 }
 0x593   :  { %v1041_v23 = vadd.f32 %v1067_v21, %v1040_v22 }
 0x594   :  { %v1173_v24 = vpop.f32.mrf.mxu1 }
 0x595   :  { %1045 = vst.msk [vmem:[%s1500_s16] sm:$0x3] %vm1044_vm4, %v1041_v23 }

</bundles_post_ra>
